<compile_context>
chip_gen: v7x
topology: tpu7x:2x2x1
jax: 0.10.0
libtpu: 0.0.40
codegen_flags: <defaults>
</compile_context>

<pallas_src>
import jax
import jax.numpy as jnp
from jax.experimental import pallas as pl
from jax.experimental.pallas import tpu as pltpu


def _round_up(x, m):
    return ((x + m - 1) // m) * m


def patch_rows_kernel(patch_ref, w_ref, add_ref, o_ref):
    """One row-tile of the fused patch-embedding matmul.

    patch_ref: (TM, K)     bf16 -- TM flattened (batch*patch) pixel rows
    w_ref:     (K, E_pad)  bf16 -- conv weight reshaped to a K->E projection
    add_ref:   (TM, E_pad) f32  -- (pos[1:] + conv bias), tiled to TM rows
    o_ref:     (TM, E_pad) f32
    """
    acc = jnp.dot(patch_ref[...], w_ref[...],
                  preferred_element_type=jnp.float32)   # MXU, f32 accumulate
    o_ref[...] = acc + add_ref[...]                     # single fused VPU add


def patch_embedding_forward(x, conv_w, conv_b, cls_token, pos_emb, patch_size,
                            target_tile_rows=256):
    """x: (B, C, H, W) f32, conv_w: (E, C, P, P), conv_b: (E,),
    cls_token: (1, C, E) with C == 1, pos_emb: (1, N+1, E)."""
    B, C, H, W = x.shape
    E = conv_w.shape[0]
    P = patch_size
    assert H % P == 0 and W % P == 0
    N = (H // P) * (W // P)
    K = C * P * P
    assert cls_token.shape[1] == 1, "cls_token broadcast requires in_channels == 1"

    # ---- wrapper glue (plain JAX, batch-invariant work done ONCE) ----
    # Patchify NCHW -> (B*N, K): batch flattened into the matmul M dimension.
    patches = (x.reshape(B, C, H // P, P, W // P, P)
                 .transpose(0, 2, 4, 1, 3, 5)
                 .reshape(B * N, K))
    # TODO(synk): the patchify transpose is one extra HBM pass; an in-kernel
    # rearrange from a (bpt, C, H, W) block (memory_space=pl.ANY) would remove it.

    # Row tile: multiple of N (so the pos pattern repeats exactly per tile)
    # and of 8 sublanes, targeting ~target_tile_rows rows per grid step.
    bpt = max(1, target_tile_rows // N)       # batch elements per tile
    bpt = min(bpt, B)
    while (bpt * N) % 8 != 0:
        bpt += 1
    TM = bpt * N
    B_pad = _round_up(B, bpt)
    rows = B * N
    rows_pad = B_pad * N
    if rows_pad != rows:
        patches = jnp.pad(patches, ((0, rows_pad - rows), (0, 0)))

    # Lane-dense output: pad the embedding dim to a multiple of 128.
    E_pad = _round_up(E, 128)

    w_k2e = conv_w.reshape(E, K).T                                   # (K, E)
    pos = pos_emb.reshape(N + 1, E)
    add = pos[1:] + conv_b[None, :]                                  # (N, E)
    if E_pad != E:
        w_k2e = jnp.pad(w_k2e, ((0, 0), (0, E_pad - E)))
        add = jnp.pad(add, ((0, 0), (0, E_pad - E)))
    add_tile = jnp.tile(add, (bpt, 1)).astype(jnp.float32)           # (TM, E_pad)

    # bf16 matmul inputs, f32 accumulation (full MXU rate on v6e/v7x).
    patches_bf16 = patches.astype(jnp.bfloat16)
    w_bf16 = w_k2e.astype(jnp.bfloat16)

    out_rows = pl.pallas_call(
        patch_rows_kernel,
        out_shape=jax.ShapeDtypeStruct((rows_pad, E_pad), jnp.float32),
        grid_spec=pltpu.PrefetchScalarGridSpec(
            num_scalar_prefetch=0,
            grid=(rows_pad // TM,),
            in_specs=[
                pl.BlockSpec((TM, K), lambda i: (i, 0)),        # patch rows
                pl.BlockSpec((K, E_pad), lambda i: (0, 0)),     # weights (resident)
                pl.BlockSpec((TM, E_pad), lambda i: (0, 0)),    # pos+bias (resident)
            ],
            out_specs=pl.BlockSpec((TM, E_pad), lambda i: (i, 0)),
        ),
        compiler_params=pltpu.CompilerParams(
            dimension_semantics=("parallel",)),
    )(patches_bf16, w_bf16, add_tile)

    emb = out_rows[:rows, :E].reshape(B, N, E)

    # cls row is batch-independent: compute once, broadcast, concat outside.
    cls_row = cls_token.reshape(1, 1, E) + pos_emb[:, :1, :]         # (1, 1, E)
    out = jnp.concatenate([jnp.broadcast_to(cls_row, (B, 1, E)), emb], axis=1)
    # TODO(synk): dropout is identity (eval mode / p=0); a training-mode version
    # would apply a pltpu.prng_random_bits keep-mask inside the kernel.
    return out


def _reference(x, conv_w, conv_b, cls_token, pos_emb, patch_size):
    """Pure-JAX f32 reference mirroring the PyTorch forward (eval mode)."""
    B, C, H, W = x.shape
    E = conv_w.shape[0]
    P = patch_size
    N = (H // P) * (W // P)
    patches = (x.reshape(B, C, H // P, P, W // P, P)
                 .transpose(0, 2, 4, 1, 3, 5)
                 .reshape(B, N, C * P * P))
    emb = patches @ conv_w.reshape(E, -1).T + conv_b                 # (B, N, E)
    cls = jnp.broadcast_to(cls_token, (B, cls_token.shape[1], E))
    return jnp.concatenate([cls, emb], axis=1) + pos_emb


if __name__ == "__main__":
    # Small, MNIST-like config: 1 input channel, 16x16 image, 4x4 patches.
    B, C, H, W = 2, 1, 16, 16
    patch_size = 4
    embed_dim = 32
    num_patches = (H // patch_size) * (W // patch_size)              # 16

    key = jax.random.PRNGKey(0)
    k_x, k_w, k_b, k_cls, k_pos = jax.random.split(key, 5)

    x = jax.random.normal(k_x, (B, C, H, W), dtype=jnp.float32)
    conv_w = jax.random.normal(k_w, (embed_dim, C, patch_size, patch_size),
                               dtype=jnp.float32) * 0.1
    conv_b = jax.random.normal(k_b, (embed_dim,), dtype=jnp.float32) * 0.1
    cls_token = jax.random.normal(k_cls, (1, C, embed_dim), dtype=jnp.float32)
    pos_emb = jax.random.normal(k_pos, (1, num_patches + 1, embed_dim),
                                dtype=jnp.float32)

    out = patch_embedding_forward(x, conv_w, conv_b, cls_token, pos_emb,
                                  patch_size)
    out = jax.block_until_ready(out)

    ref = _reference(x, conv_w, conv_b, cls_token, pos_emb, patch_size)
    assert out.shape == (B, num_patches + 1, embed_dim)
    # bf16 matmul inputs (f32 accumulate) vs pure-f32 reference: loose tol.
    assert jnp.allclose(out, ref, atol=2e-2, rtol=2e-2)
    print("KERNEL_OK")
</pallas_src>

<mosaic_0001>
module attributes {stable_mosaic.version = 11 : i64} {
  func.func @patch_rows_kernel(%arg0: i32, %arg1: memref<32x16xbf16, #tpu.memory_space<vmem>>, %arg2: memref<16x128xbf16, #tpu.memory_space<vmem>>, %arg3: memref<32x128xf32, #tpu.memory_space<vmem>>, %arg4: memref<32x128xf32, #tpu.memory_space<vmem>>) attributes {dimension_semantics = [#tpu.dimension_semantics<parallel>], iteration_bounds = array<i64: 1>, scalar_prefetch = 0 : i64, scratch_operands = 0 : i64, tpu.core_type = #tpu.core_type<tc>, window_params = [{transform_indices = @transform_0, window_bounds = array<i64: 32, 16>}, {pipeline_mode = #tpu.pipeline_mode<synchronous>, transform_indices = @transform_1, window_bounds = array<i64: 16, 128>}, {pipeline_mode = #tpu.pipeline_mode<synchronous>, transform_indices = @transform_2, window_bounds = array<i64: 32, 128>}, {transform_indices = @transform_3, window_bounds = array<i64: 32, 128>}]} {
    %c0 = arith.constant 0 : index
    %c0_0 = arith.constant 0 : index
    %0 = vector.load %arg1[%c0, %c0_0] : memref<32x16xbf16, #tpu.memory_space<vmem>>, vector<32x16xbf16>
    %c0_1 = arith.constant 0 : index
    %c0_2 = arith.constant 0 : index
    %1 = vector.load %arg2[%c0_1, %c0_2] : memref<16x128xbf16, #tpu.memory_space<vmem>>, vector<16x128xbf16>
    %cst = arith.constant dense<0.000000e+00> : vector<32x128xf32>
    %2 = tpu.matmul %0, %1, %cst {dimension_numbers = #tpu.dot_dimension_numbers<[1], [0], [0], [1], [0, 0, 1, 1], [], []>} : vector<32x16xbf16>, vector<16x128xbf16>, vector<32x128xf32> -> vector<32x128xf32>
    %c0_3 = arith.constant 0 : index
    %c0_4 = arith.constant 0 : index
    %3 = vector.load %arg3[%c0_3, %c0_4] : memref<32x128xf32, #tpu.memory_space<vmem>>, vector<32x128xf32>
    %4 = arith.addf %2, %3 : vector<32x128xf32>
    %c0_5 = arith.constant 0 : index
    %c0_6 = arith.constant 0 : index
    %5 = vector.load %arg4[%c0_5, %c0_6] : memref<32x128xf32, #tpu.memory_space<vmem>>, vector<32x128xf32>
    tpu.vector_store %arg4[%c0_5, %c0_6], %4 {strides = array<i32>} : memref<32x128xf32, #tpu.memory_space<vmem>>, vector<32x128xf32>,
    return
  }
  func.func @transform_0(%arg0: i32) -> (i32, i32) {
    %c0_i32 = arith.constant 0 : i32
    %c0_i32_0 = arith.constant 0 : i32
    return %arg0, %c0_i32 : i32, i32
  }
  func.func @transform_1(%arg0: i32) -> (i32, i32) {
    %c0_i32 = arith.constant 0 : i32
    %c0_i32_0 = arith.constant 0 : i32
    %c0_i32_1 = arith.constant 0 : i32
    return %c0_i32, %c0_i32_0 : i32, i32
  }
  func.func @transform_2(%arg0: i32) -> (i32, i32) {
    %c0_i32 = arith.constant 0 : i32
    %c0_i32_0 = arith.constant 0 : i32
    %c0_i32_1 = arith.constant 0 : i32
    return %c0_i32, %c0_i32_0 : i32, i32
  }
  func.func @transform_3(%arg0: i32) -> (i32, i32) {
    %c0_i32 = arith.constant 0 : i32
    %c0_i32_0 = arith.constant 0 : i32
    return %arg0, %c0_i32 : i32, i32
  }
}

</mosaic_0001>

<bundles_post_ra>
// kernel: tpu_custom_call.1
= control target key start
LH: loop header
LB: loop body
LE: loop exit
PB: predicated region body
PF: predicated region fallthrough
CT: control target
= control target key end

     0   :  { %8 = vsyncpa [#allocation3], 0  ;;  %s265_s0 = inlined_call_operand.vmem [shape: bf16[32,16], index: 0, kind: input, shape index: {}]   ;;  %s266_s1 = inlined_call_operand.vmem [shape: bf16[16,128], index: 1, kind: input, shape index: {}]   ;;  %s267_s2 = inlined_call_operand.hbm [shape: f32[32,128], index: 2, kind: input, shape index: {}]   ;;  %s268_s3 = inlined_call_operand.hbm [shape: f32[32,128], index: 3, kind: output, shape index: {}]  }
   0x1   :  { %9 = vsyncpa [#allocation4], 0  ;;  %s202_s12 = smov [#allocation2]   ;;  %s154_s16 = scalar_lea.hbm %s267_s2, 512 }
   0x2   :  { %s19_s13 = sshll.u32 %s202_s12, 4  ;;  %p155_p0 = scmp.ne.s32.totalorder %s267_s2, %s154_s16  ;;  %s20_s13 = int_to_ptr.vmem [resolvable:$true] %s19_s13 }
   0x3   :  { %p158_p1 = scmp.lt.u32.totalorder %s154_s16, %s267_s2 }
   0x5   :  { %p160_p2 = pnand %p158_p1, %p155_p0 }
   0x7   :  { %163 = shalt.err (!%p160_p2)
}
   0x8   :  { %s164_s21 = scalar_lea.vmem %s20_s13, 512  ;;  %p169_p4 = scmp.lt.s32.totalorder %s20_s13, %s20_s13 }
   0x9   :  { %p165_p3 = scmp.ne.s32.totalorder %s20_s13, %s164_s21  ;;  %p170_p5 = scmp.lt.s32.totalorder %s164_s21, %s164_s21 }
   0xb   :  { %p171_p6 = por %p170_p5, %p169_p4 }
   0xd   :  { %p172_p7 = pnand %p171_p6, %p165_p3 }
   0xf   :  { %175 = shalt.err (!%p172_p7)
}
  0x10   :  { %s203_s22 = smov 128   ;;  %s204_s23 = smov 8  }
  0x11   :  { %25 = dma.hbm_to_vmem [thread:$0]  %s267_s2, 512, %s20_s13, [#allocation3], %s203_s22, %s203_s22, %s204_s23  }
  0x12   :  { %198 = dma.done.wait [#allocation3], 512  }
  0x13   :  { %199 = vsyncadd [#allocation3], 4294966784  ;;  %v151_v0 = vld [vmem:[%s266_s1] sm:$0xff]   ;;  %vm56_vm0 = vcmask 130048   ;;  %v153_v2 = vld [vmem:[%s265_s0 + $0x8] sm:$0xff]   ;;  %s205_s1 = smov [#allocation5]  }
  0x14   :  { %v152_v1 = vld [vmem:[%s265_s0] sm:$0xff]   ;;  %141 = vmatprep.subr.bf16.mxu0 %v151_v0  ;;  %v36_v4 = vld [vmem:[#allocation2] sm:$0xff]  ;;  %v39_v6 = vld [vmem:[#allocation2 + $0x18] sm:$0xff]  ;;  %s121_s2 = sshll.u32 %s205_s1, 4  ;;  %s122_s2 = int_to_ptr.vmem [resolvable:$true] %s121_s2 }
  0x15   :  { %142 = vmatpush3.bf16.msra.mxu0 %v151_v0  ;;  %143 = vmatprep.mubr.msk.bf16.mxu0 %vm56_vm0, %v152_v1  ;;  %v38_v3 = vld [vmem:[#allocation2 + $0x10] sm:$0xff]  ;;  %v37_v9 = vld [vmem:[#allocation2 + $0x8] sm:$0xff]  ;;  %s176_s0 = scalar_lea.vmem %s122_s2, 512  ;;  %p181_p9 = scmp.lt.s32.totalorder %s122_s2, %s122_s2 }
  0x16   :  { %p177_p8 = scmp.ne.s32.totalorder %s122_s2, %s176_s0  ;;  %p182_p10 = scmp.lt.s32.totalorder %s176_s0, %s176_s0 }
  0x18   :  { %144 = vmatmul.mubr.msk.bf16.vlgmr.msra.gmra.mrb[0].mxu0 %vm56_vm0, %v153_v2  ;;  %p183_p11 = por %p182_p10, %p181_p9 }
  0x1a   :  { %p184_p12 = pnand %p183_p11, %p177_p8 }
  0xeb   :  { %v145_v5 = vpop.f32.mrb[0].mxu0 }
  0xec   :  { %v106_v7 = vadd.f32 %v145_v5, %v38_v3  ;;  %v97_v8 = vpop.f32.mrb[1].mxu0 }
  0xed   :  { %v98_v10 = vadd.f32 %v97_v8, %v36_v4  ;;  %v146_v11 = vpop.f32.mrb[2].mxu0 }
  0xee   :  { %114 = vst [vmem:[#allocation5 + $0x10] sm:$0xff] %v106_v7  ;;  %v109_v12 = vadd.f32 %v146_v11, %v39_v6  ;;  %v100_v13 = vpop.f32.mrb[3].mxu0 }
  0xef   :  { %112 = vst [vmem:[#allocation5] sm:$0xff] %v98_v10  ;;  %v101_v14 = vadd.f32 %v100_v13, %v37_v9 }
  0xf0   :  { %115 = vst [vmem:[#allocation5 + $0x18] sm:$0xff] %v109_v12 }
  0xf1   :  { %113 = vst [vmem:[#allocation5 + $0x8] sm:$0xff] %v101_v14 }
  0xf2   :  { %187 = shalt.err (!%p184_p12)
}
  0xf3   :  { %s188_s7 = scalar_lea.hbm %s268_s3, 512 }
  0xf4   :  { %p189_p13 = scmp.ne.s32.totalorder %s268_s3, %s188_s7  ;;  %p192_p0 = scmp.lt.u32.totalorder %s188_s7, %s268_s3 }
  0xf6   :  { %p194_p1 = pnand %p192_p0, %p189_p13 }
  0xf8   :  { %197 = shalt.err (!%p194_p1)
}
  0xf9   :  { %127 = dma.vmem_to_hbm [thread:$0]  %s122_s2, 512, %s268_s3, [#allocation4], %s203_s22, %s203_s22, %s204_s23  }
  0xfa   :  { %200 = dma.done.wait [#allocation4], 512  }
  0xfb   :  { %201 = vsyncadd [#allocation4], 4294966784 }
  0xfc   :  { %131 = vsyncpa [#allocation3], 1 }
  0xfd   :  { %132 = vsyncpa [#allocation4], 1 }

</bundles_post_ra>
